<compile_context>
chip_gen: v5e
topology: v5e:2x2
jax: 0.10.0
libtpu: 0.0.40
codegen_flags: <defaults>
</compile_context>

<pallas_src>
import functools

import jax
import jax.numpy as jnp
from jax.experimental import pallas as pl
from jax.experimental.pallas import tpu as pltpu

HIDDEN = 512
LANE = 128


def _round_up(x, m):
    return ((x + m - 1) // m) * m


def dqn_kernel(x_ref, w1_ref, b1_ref, w2_ref, b2_ref, w3_ref, b3_ref, o_ref):
    # Layer 1: (bm, K_pad) @ (K_pad, 512); bf16 operands, f32 accumulate.
    x = x_ref[...].astype(jnp.bfloat16)
    h1 = jnp.dot(x, w1_ref[...], preferred_element_type=jnp.float32) + b1_ref[...]
    h1 = jnp.maximum(h1, 0.0)                      # f32 elementwise (v5e-safe)

    # Layer 2: (bm, 512) @ (512, 512)
    h2 = jnp.dot(h1.astype(jnp.bfloat16), w2_ref[...],
                 preferred_element_type=jnp.float32) + b2_ref[...]
    h2 = jnp.maximum(h2, 0.0)

    # Layer 3: (bm, 512) @ (512, N_pad) -> lane-dense f32 store.
    out = jnp.dot(h2.astype(jnp.bfloat16), w3_ref[...],
                  preferred_element_type=jnp.float32) + b3_ref[...]
    o_ref[...] = out.astype(o_ref.dtype)


@functools.partial(jax.jit, static_argnames=("batch_tile",))
def dqn_forward(x, params, *, batch_tile=256):
    """x: (B, obs_dims) f32; params: w{1,2,3} bf16 stored (in,out), b{1,2,3} f32 (1,out)."""
    B, obs = x.shape
    H = params["w1"].shape[1]
    act = params["w3"].shape[1]

    K_pad = _round_up(obs, LANE)          # lane-dense first-layer K
    N_pad = _round_up(act, LANE)          # lane-dense output stores
    bm = min(batch_tile, _round_up(B, 8))  # batch tile (sublane multiple of 8)
    B_pad = _round_up(B, bm)

    # Zero-pad inputs / edge weights in plain JAX (padding contributes zeros).
    x_p = jnp.zeros((B_pad, K_pad), jnp.float32).at[:B, :obs].set(x)
    w1 = jnp.zeros((K_pad, H), jnp.bfloat16).at[:obs, :].set(params["w1"])
    b1 = params["b1"]
    w2 = params["w2"]
    b2 = params["b2"]
    w3 = jnp.zeros((H, N_pad), jnp.bfloat16).at[:, :act].set(params["w3"])
    b3 = jnp.zeros((1, N_pad), jnp.float32).at[:, :act].set(params["b3"])

    grid = (B_pad // bm,)

    # Weight/bias blocks always map to block 0 -> VMEM-resident across the
    # batch grid; x/out tiles are streamed and double-buffered by Pallas.
    in_specs = [
        pl.BlockSpec((bm, K_pad), lambda i: (i, 0)),   # x tile
        pl.BlockSpec((K_pad, H), lambda i: (0, 0)),    # w1
        pl.BlockSpec((1, H), lambda i: (0, 0)),        # b1
        pl.BlockSpec((H, H), lambda i: (0, 0)),        # w2
        pl.BlockSpec((1, H), lambda i: (0, 0)),        # b2
        pl.BlockSpec((H, N_pad), lambda i: (0, 0)),    # w3
        pl.BlockSpec((1, N_pad), lambda i: (0, 0)),    # b3
    ]
    out_spec = pl.BlockSpec((bm, N_pad), lambda i: (i, 0))

    bytes_accessed = (
        x_p.size * 4 + w1.size * 2 + w2.size * 2 + w3.size * 2
        + b1.size * 4 + b2.size * 4 + b3.size * 4 + B_pad * N_pad * 4
    )
    cost = pl.CostEstimate(
        flops=2 * B_pad * (K_pad * H + H * H + H * N_pad),
        transcendentals=0,
        bytes_accessed=bytes_accessed,
    )

    out = pl.pallas_call(
        dqn_kernel,
        out_shape=jax.ShapeDtypeStruct((B_pad, N_pad), jnp.float32),
        grid_spec=pltpu.PrefetchScalarGridSpec(
            num_scalar_prefetch=0,
            grid=grid,
            in_specs=in_specs,
            out_specs=out_spec,
        ),
        compiler_params=pltpu.CompilerParams(
            # single batch axis: shards grid steps across v7x's 2 TCs,
            # no-op (but free) at tiny batch.
            dimension_semantics=("parallel",),
            # sized for v7x's 64 MiB VMEM (usage here is only a few MiB).
            vmem_limit_bytes=32 * 1024 * 1024,
        ),
        cost_estimate=cost,
    )(x_p, w1, b1, w2, b2, w3, b3)

    return out[:B, :act]


def init_params(key, observation_dims, action_dims, hidden=HIDDEN):
    """PyTorch-Linear-style init (uniform +/- 1/sqrt(fan_in)); weights stored (in,out) bf16."""
    dims = [(observation_dims, hidden), (hidden, hidden), (hidden, action_dims)]
    params = {}
    for idx, (fan_in, fan_out) in enumerate(dims, start=1):
        key, kw, kb = jax.random.split(key, 3)
        bound = 1.0 / jnp.sqrt(jnp.float32(fan_in))
        w = jax.random.uniform(kw, (fan_in, fan_out), jnp.float32,
                               minval=-bound, maxval=bound)
        b = jax.random.uniform(kb, (1, fan_out), jnp.float32,
                               minval=-bound, maxval=bound)
        params[f"w{idx}"] = w.astype(jnp.bfloat16)   # DMA'd as bf16
        params[f"b{idx}"] = b                        # biases stay f32
    return params


def dqn_reference(x, p):
    """Pure-JAX reference mirroring the kernel's bf16-operand / f32-accumulate math."""
    def bf(v):
        return v.astype(jnp.bfloat16).astype(jnp.float32)

    w1 = p["w1"].astype(jnp.float32)
    w2 = p["w2"].astype(jnp.float32)
    w3 = p["w3"].astype(jnp.float32)
    h1 = jnp.maximum(bf(x) @ w1 + p["b1"], 0.0)
    h2 = jnp.maximum(bf(h1) @ w2 + p["b2"], 0.0)
    return bf(h2) @ w3 + p["b3"]


if __name__ == "__main__":
    observation_dims = 32
    action_dims = 8
    batch = 8

    key = jax.random.PRNGKey(0)
    key, kx = jax.random.split(key)
    x = jax.random.normal(kx, (batch, observation_dims), dtype=jnp.float32)
    params = init_params(key, observation_dims, action_dims)

    out = dqn_forward(x, params)
    out = jax.block_until_ready(out)

    ref = dqn_reference(x, params)
    assert out.shape == (batch, action_dims)
    assert jnp.allclose(out, ref, atol=1e-2, rtol=1e-2), "mismatch vs reference"

    print("KERNEL_OK")
</pallas_src>

<mosaic_0001>
module attributes {stable_mosaic.version = 11 : i64} {
  func.func @dqn_kernel(%arg0: i32, %arg1: memref<8x128xf32, #tpu.memory_space<vmem>>, %arg2: memref<128x512xbf16, #tpu.memory_space<vmem>>, %arg3: memref<1x512xf32, #tpu.memory_space<vmem>>, %arg4: memref<512x512xbf16, #tpu.memory_space<vmem>>, %arg5: memref<1x512xf32, #tpu.memory_space<vmem>>, %arg6: memref<512x128xbf16, #tpu.memory_space<vmem>>, %arg7: memref<1x128xf32, #tpu.memory_space<vmem>>, %arg8: memref<8x128xf32, #tpu.memory_space<vmem>>) attributes {dimension_semantics = [#tpu.dimension_semantics<parallel>], iteration_bounds = array<i64: 1>, scalar_prefetch = 0 : i64, scratch_operands = 0 : i64, tpu.core_type = #tpu.core_type<tc>, window_params = [{transform_indices = @transform_0, window_bounds = array<i64: 8, 128>}, {pipeline_mode = #tpu.pipeline_mode<synchronous>, transform_indices = @transform_1, window_bounds = array<i64: 128, 512>}, {pipeline_mode = #tpu.pipeline_mode<synchronous>, transform_indices = @transform_2, window_bounds = array<i64: 1, 512>}, {pipeline_mode = #tpu.pipeline_mode<synchronous>, transform_indices = @transform_3, window_bounds = array<i64: 512, 512>}, {pipeline_mode = #tpu.pipeline_mode<synchronous>, transform_indices = @transform_4, window_bounds = array<i64: 1, 512>}, {pipeline_mode = #tpu.pipeline_mode<synchronous>, transform_indices = @transform_5, window_bounds = array<i64: 512, 128>}, {pipeline_mode = #tpu.pipeline_mode<synchronous>, transform_indices = @transform_6, window_bounds = array<i64: 1, 128>}, {transform_indices = @transform_7, window_bounds = array<i64: 8, 128>}]} {
    %c0 = arith.constant 0 : index
    %c0_0 = arith.constant 0 : index
    %0 = vector.load %arg1[%c0, %c0_0] : memref<8x128xf32, #tpu.memory_space<vmem>>, vector<8x128xf32>
    %1 = arith.truncf %0 : vector<8x128xf32> to vector<8x128xbf16>
    %c0_1 = arith.constant 0 : index
    %c0_2 = arith.constant 0 : index
    %2 = vector.load %arg2[%c0_1, %c0_2] : memref<128x512xbf16, #tpu.memory_space<vmem>>, vector<128x512xbf16>
    %cst = arith.constant dense<0.000000e+00> : vector<8x512xf32>
    %3 = tpu.matmul %1, %2, %cst {dimension_numbers = #tpu.dot_dimension_numbers<[1], [0], [0], [1], [0, 0, 1, 1], [], []>} : vector<8x128xbf16>, vector<128x512xbf16>, vector<8x512xf32> -> vector<8x512xf32>
    %c0_3 = arith.constant 0 : index
    %c0_4 = arith.constant 0 : index
    %4 = vector.load %arg3[%c0_3, %c0_4] : memref<1x512xf32, #tpu.memory_space<vmem>>, vector<1x512xf32>
    %5 = vector.broadcast %4 : vector<1x512xf32> to vector<8x512xf32>
    %6 = arith.addf %3, %5 : vector<8x512xf32>
    %cst_5 = arith.constant 0.000000e+00 : f32
    %7 = vector.broadcast %cst_5 : f32 to vector<8x512xf32>
    %8 = arith.maximumf %6, %7 : vector<8x512xf32>
    %9 = arith.truncf %8 : vector<8x512xf32> to vector<8x512xbf16>
    %c0_6 = arith.constant 0 : index
    %c0_7 = arith.constant 0 : index
    %10 = vector.load %arg4[%c0_6, %c0_7] : memref<512x512xbf16, #tpu.memory_space<vmem>>, vector<512x512xbf16>
    %cst_8 = arith.constant dense<0.000000e+00> : vector<8x512xf32>
    %11 = tpu.matmul %9, %10, %cst_8 {dimension_numbers = #tpu.dot_dimension_numbers<[1], [0], [0], [1], [0, 0, 1, 1], [], []>} : vector<8x512xbf16>, vector<512x512xbf16>, vector<8x512xf32> -> vector<8x512xf32>
    %c0_9 = arith.constant 0 : index
    %c0_10 = arith.constant 0 : index
    %12 = vector.load %arg5[%c0_9, %c0_10] : memref<1x512xf32, #tpu.memory_space<vmem>>, vector<1x512xf32>
    %13 = vector.broadcast %12 : vector<1x512xf32> to vector<8x512xf32>
    %14 = arith.addf %11, %13 : vector<8x512xf32>
    %cst_11 = arith.constant 0.000000e+00 : f32
    %15 = vector.broadcast %cst_11 : f32 to vector<8x512xf32>
    %16 = arith.maximumf %14, %15 : vector<8x512xf32>
    %17 = arith.truncf %16 : vector<8x512xf32> to vector<8x512xbf16>
    %c0_12 = arith.constant 0 : index
    %c0_13 = arith.constant 0 : index
    %18 = vector.load %arg6[%c0_12, %c0_13] : memref<512x128xbf16, #tpu.memory_space<vmem>>, vector<512x128xbf16>
    %cst_14 = arith.constant dense<0.000000e+00> : vector<8x128xf32>
    %19 = tpu.matmul %17, %18, %cst_14 {dimension_numbers = #tpu.dot_dimension_numbers<[1], [0], [0], [1], [0, 0, 1, 1], [], []>} : vector<8x512xbf16>, vector<512x128xbf16>, vector<8x128xf32> -> vector<8x128xf32>
    %c0_15 = arith.constant 0 : index
    %c0_16 = arith.constant 0 : index
    %20 = vector.load %arg7[%c0_15, %c0_16] : memref<1x128xf32, #tpu.memory_space<vmem>>, vector<1x128xf32>
    %21 = vector.broadcast %20 : vector<1x128xf32> to vector<8x128xf32>
    %22 = arith.addf %19, %21 : vector<8x128xf32>
    %c0_17 = arith.constant 0 : index
    %c0_18 = arith.constant 0 : index
    %23 = vector.load %arg8[%c0_17, %c0_18] : memref<8x128xf32, #tpu.memory_space<vmem>>, vector<8x128xf32>
    tpu.vector_store %arg8[%c0_17, %c0_18], %22 {strides = array<i32>} : memref<8x128xf32, #tpu.memory_space<vmem>>, vector<8x128xf32>,
    return
  }
  func.func @transform_0(%arg0: i32) -> (i32, i32) {
    %c0_i32 = arith.constant 0 : i32
    %c0_i32_0 = arith.constant 0 : i32
    return %arg0, %c0_i32 : i32, i32
  }
  func.func @transform_1(%arg0: i32) -> (i32, i32) {
    %c0_i32 = arith.constant 0 : i32
    %c0_i32_0 = arith.constant 0 : i32
    %c0_i32_1 = arith.constant 0 : i32
    return %c0_i32, %c0_i32_0 : i32, i32
  }
  func.func @transform_2(%arg0: i32) -> (i32, i32) {
    %c0_i32 = arith.constant 0 : i32
    %c0_i32_0 = arith.constant 0 : i32
    %c0_i32_1 = arith.constant 0 : i32
    return %c0_i32, %c0_i32_0 : i32, i32
  }
  func.func @transform_3(%arg0: i32) -> (i32, i32) {
    %c0_i32 = arith.constant 0 : i32
    %c0_i32_0 = arith.constant 0 : i32
    %c0_i32_1 = arith.constant 0 : i32
    return %c0_i32, %c0_i32_0 : i32, i32
  }
  func.func @transform_4(%arg0: i32) -> (i32, i32) {
    %c0_i32 = arith.constant 0 : i32
    %c0_i32_0 = arith.constant 0 : i32
    %c0_i32_1 = arith.constant 0 : i32
    return %c0_i32, %c0_i32_0 : i32, i32
  }
  func.func @transform_5(%arg0: i32) -> (i32, i32) {
    %c0_i32 = arith.constant 0 : i32
    %c0_i32_0 = arith.constant 0 : i32
    %c0_i32_1 = arith.constant 0 : i32
    return %c0_i32, %c0_i32_0 : i32, i32
  }
  func.func @transform_6(%arg0: i32) -> (i32, i32) {
    %c0_i32 = arith.constant 0 : i32
    %c0_i32_0 = arith.constant 0 : i32
    %c0_i32_1 = arith.constant 0 : i32
    return %c0_i32, %c0_i32_0 : i32, i32
  }
  func.func @transform_7(%arg0: i32) -> (i32, i32) {
    %c0_i32 = arith.constant 0 : i32
    %c0_i32_0 = arith.constant 0 : i32
    return %arg0, %c0_i32 : i32, i32
  }
}

</mosaic_0001>

<bundles_post_ra>
// kernel: dqn_forward.1
= control target key start
LH: loop header
LB: loop body
LE: loop exit
PB: predicated region body
PF: predicated region fallthrough
CT: control target
= control target key end

     0   :  { %s3744_s0 = inlined_call_operand.vmem [shape: f32[8,128], index: 0, kind: input, shape index: {}]   ;;  %s3745_s1 = inlined_call_operand.vmem [shape: bf16[128,512], index: 1, kind: input, shape index: {}]   ;;  %s3746_s2 = inlined_call_operand.vmem [shape: f32[1,512], index: 2, kind: input, shape index: {}]   ;;  %s3747_s3 = inlined_call_operand.vmem [shape: bf16[512,512], index: 3, kind: input, shape index: {}]   ;;  %s3748_s4 = inlined_call_operand.vmem [shape: f32[1,512], index: 4, kind: input, shape index: {}]   ;;  %s3749_s5 = inlined_call_operand.vmem [shape: bf16[512,128], index: 5, kind: input, shape index: {}]   ;;  %s3750_s6 = inlined_call_operand.vmem [shape: f32[1,128], index: 6, kind: input, shape index: {}]   ;;  %s3751_s7 = inlined_call_operand.hbm [shape: f32[8,128], index: 7, kind: output, shape index: {}]  }
   0x1   :  { %v1728_v0 = vld [vmem:[%s3745_s1 + $0xe0] sm:$0xf]  ;;  %v2412_v1 = vld [vmem:[%s3745_s1 + $0xec] sm:$0xf0]  ;;  %v2410_v2 = vld [vmem:[%s3745_s1 + $0xe4] sm:$0xf] }
   0x2   :  { %v1729_v3 = vor.u32 %v2412_v1, %v1728_v0  ;;  %v1730_v4 = vld [vmem:[%s3745_s1 + $0xf0] sm:$0xf0]  ;;  %v1736_v5 = vld [vmem:[%s3745_s1 + $0xe8] sm:$0xf]  ;;  %v2413_v6 = vld [vmem:[%s3745_s1 + $0xf4] sm:$0xf0] }
   0x3   :  { %v1733_v7 = vor.u32 %v2410_v2, %v1730_v4  ;;  %v1737_v8 = vor.u32 %v2413_v6, %v1736_v5  ;;  %v2411_v9 = vld [vmem:[%s3745_s1 + $0xec] sm:$0xf]  ;;  %v1738_v10 = vld [vmem:[%s3745_s1 + $0xf8] sm:$0xf0]  ;;  %v1712_v11 = vld [vmem:[%s3745_s1 + $0xc0] sm:$0xf] }
   0x4   :  { %231 = vmatpush.bf16.msra.mxu0 %v1729_v3  ;;  %v1741_v12 = vor.u32 %v2411_v9, %v1738_v10  ;;  %v2408_v13 = vld [vmem:[%s3745_s1 + $0xcc] sm:$0xf0]  ;;  %v2406_v14 = vld [vmem:[%s3745_s1 + $0xc4] sm:$0xf]  ;;  %v1714_v15 = vld [vmem:[%s3745_s1 + $0xd0] sm:$0xf0] }
   0x5   :  { %244 = vmatpush.bf16.msra.mxu1 %v1733_v7  ;;  %257 = vmatpush.bf16.msra.mxu2 %v1737_v8  ;;  %v1713_v16 = vor.u32 %v2408_v13, %v1712_v11  ;;  %v1717_v17 = vor.u32 %v2406_v14, %v1714_v15  ;;  %v1720_v18 = vld [vmem:[%s3745_s1 + $0xc8] sm:$0xf]  ;;  %v2409_v19 = vld [vmem:[%s3745_s1 + $0xd4] sm:$0xf0]  ;;  %v2407_v20 = vld [vmem:[%s3745_s1 + $0xcc] sm:$0xf] }
   0x6   :  { %270 = vmatpush.bf16.msra.mxu3 %v1741_v12  ;;  %v1721_v21 = vor.u32 %v2409_v19, %v1720_v18  ;;  %v1722_v22 = vld [vmem:[%s3745_s1 + $0xd8] sm:$0xf0]  ;;  %v1696_v23 = vld [vmem:[%s3745_s1 + $0xa0] sm:$0xf]  ;;  %v2404_v24 = vld [vmem:[%s3745_s1 + $0xac] sm:$0xf0] }
   0x7   :  { %v1725_v25 = vor.u32 %v2407_v20, %v1722_v22  ;;  %v2402_v26 = vld [vmem:[%s3745_s1 + $0xa4] sm:$0xf]  ;;  %v1698_v27 = vld [vmem:[%s3745_s1 + $0xb0] sm:$0xf0]  ;;  %v1704_v28 = vld [vmem:[%s3745_s1 + $0xa8] sm:$0xf]  ;;  %v1697_v29 = vor.u32 %v2404_v24, %v1696_v23 }
   0x8   :  { %232 = vmatpush.bf16.msra.mxu0 %v1713_v16  ;;  %v2405_v30 = vld [vmem:[%s3745_s1 + $0xb4] sm:$0xf0]  ;;  %v2403_v31 = vld [vmem:[%s3745_s1 + $0xac] sm:$0xf]  ;;  %v1706_v32 = vld [vmem:[%s3745_s1 + $0xb8] sm:$0xf0]  ;;  %v1701_v33 = vor.u32 %v2402_v26, %v1698_v27 }
   0x9   :  { %245 = vmatpush.bf16.msra.mxu1 %v1717_v17  ;;  %258 = vmatpush.bf16.msra.mxu2 %v1721_v21  ;;  %v1705_v34 = vor.u32 %v2405_v30, %v1704_v28  ;;  %v1680_v35 = vld [vmem:[%s3745_s1 + $0x80] sm:$0xf]  ;;  %v2400_v36 = vld [vmem:[%s3745_s1 + $0x8c] sm:$0xf0]  ;;  %v2398_v37 = vld [vmem:[%s3745_s1 + $0x84] sm:$0xf]  ;;  %v1709_v38 = vor.u32 %v2403_v31, %v1706_v32 }
   0xa   :  { %271 = vmatpush.bf16.msra.mxu3 %v1725_v25  ;;  %v1682_v39 = vld [vmem:[%s3745_s1 + $0x90] sm:$0xf0]  ;;  %v1688_v40 = vld [vmem:[%s3745_s1 + $0x88] sm:$0xf]  ;;  %v2401_v41 = vld [vmem:[%s3745_s1 + $0x94] sm:$0xf0]  ;;  %v1681_v44 = vor.u32 %v2400_v36, %v1680_v35 }
   0xb   :  { %v2399_v42 = vld [vmem:[%s3745_s1 + $0x8c] sm:$0xf]  ;;  %v1690_v43 = vld [vmem:[%s3745_s1 + $0x98] sm:$0xf0]  ;;  %v1685_v45 = vor.u32 %v2398_v37, %v1682_v39  ;;  %v1689_v46 = vor.u32 %v2401_v41, %v1688_v40  ;;  %v1664_v47 = vld [vmem:[%s3745_s1 + $0x60] sm:$0xf] }
   0xc   :  { %233 = vmatpush.bf16.msra.mxu0 %v1697_v29  ;;  %v2396_v48 = vld [vmem:[%s3745_s1 + $0x6c] sm:$0xf0]  ;;  %v2394_v49 = vld [vmem:[%s3745_s1 + $0x64] sm:$0xf]  ;;  %v1693_v50 = vor.u32 %v2399_v42, %v1690_v43  ;;  %v1666_v51 = vld [vmem:[%s3745_s1 + $0x70] sm:$0xf0] }
   0xd   :  { %246 = vmatpush.bf16.msra.mxu1 %v1701_v33  ;;  %259 = vmatpush.bf16.msra.mxu2 %v1705_v34  ;;  %v1672_v52 = vld [vmem:[%s3745_s1 + $0x68] sm:$0xf]  ;;  %v2397_v53 = vld [vmem:[%s3745_s1 + $0x74] sm:$0xf0]  ;;  %v2395_v54 = vld [vmem:[%s3745_s1 + $0x6c] sm:$0xf]  ;;  %v1665_v56 = vor.u32 %v2396_v48, %v1664_v47  ;;  %v1669_v57 = vor.u32 %v2394_v49, %v1666_v51 }
   0xe   :  { %272 = vmatpush.bf16.msra.mxu3 %v1709_v38  ;;  %v1674_v55 = vld [vmem:[%s3745_s1 + $0x78] sm:$0xf0]  ;;  %v1673_v58 = vor.u32 %v2397_v53, %v1672_v52  ;;  %v1648_v59 = vld [vmem:[%s3745_s1 + $0x40] sm:$0xf]  ;;  %v2392_v60 = vld [vmem:[%s3745_s1 + $0x4c] sm:$0xf0] }
   0xf   :  { %v2390_v61 = vld [vmem:[%s3745_s1 + $0x44] sm:$0xf]  ;;  %v1677_v62 = vor.u32 %v2395_v54, %v1674_v55  ;;  %v1650_v63 = vld [vmem:[%s3745_s1 + $0x50] sm:$0xf0]  ;;  %v1656_v0 = vld [vmem:[%s3745_s1 + $0x48] sm:$0xf]  ;;  %v1649_v4 = vor.u32 %v2392_v60, %v1648_v59 }
  0x10   :  { %234 = vmatpush.bf16.msra.mxu0 %v1681_v44  ;;  %v2393_v1 = vld [vmem:[%s3745_s1 + $0x54] sm:$0xf0]  ;;  %v2391_v2 = vld [vmem:[%s3745_s1 + $0x4c] sm:$0xf]  ;;  %v1658_v3 = vld [vmem:[%s3745_s1 + $0x58] sm:$0xf0]  ;;  %v1653_v5 = vor.u32 %v2390_v61, %v1650_v63 }
  0x11   :  { %247 = vmatpush.bf16.msra.mxu1 %v1685_v45  ;;  %260 = vmatpush.bf16.msra.mxu2 %v1689_v46  ;;  %v1657_v6 = vor.u32 %v2393_v1, %v1656_v0  ;;  %v1632_v7 = vld [vmem:[%s3745_s1 + $0x20] sm:$0xf]  ;;  %v2388_v8 = vld [vmem:[%s3745_s1 + $0x2c] sm:$0xf0]  ;;  %v2386_v9 = vld [vmem:[%s3745_s1 + $0x24] sm:$0xf]  ;;  %v1661_v10 = vor.u32 %v2391_v2, %v1658_v3 }
  0x12   :  { %273 = vmatpush.bf16.msra.mxu3 %v1693_v50  ;;  %v1634_v11 = vld [vmem:[%s3745_s1 + $0x30] sm:$0xf0]  ;;  %v1640_v12 = vld [vmem:[%s3745_s1 + $0x28] sm:$0xf]  ;;  %v2389_v13 = vld [vmem:[%s3745_s1 + $0x34] sm:$0xf0]  ;;  %v1633_v16 = vor.u32 %v2388_v8, %v1632_v7 }
  0x13   :  { %v2387_v14 = vld [vmem:[%s3745_s1 + $0x2c] sm:$0xf]  ;;  %v1642_v15 = vld [vmem:[%s3745_s1 + $0x38] sm:$0xf0]  ;;  %v1616_v17 = vld [vmem:[%s3745_s1] sm:$0xf]  ;;  %v1637_v18 = vor.u32 %v2386_v9, %v1634_v11  ;;  %v1641_v19 = vor.u32 %v2389_v13, %v1640_v12 }
  0x14   :  { %235 = vmatpush.bf16.msra.mxu0 %v1665_v56  ;;  %v2384_v20 = vld [vmem:[%s3745_s1 + $0xc] sm:$0xf0]  ;;  %v2382_v21 = vld [vmem:[%s3745_s1 + $0x4] sm:$0xf]  ;;  %v1618_v22 = vld [vmem:[%s3745_s1 + $0x10] sm:$0xf0]  ;;  %v1645_v23 = vor.u32 %v2387_v14, %v1642_v15 }
  0x15   :  { %248 = vmatpush.bf16.msra.mxu1 %v1669_v57  ;;  %261 = vmatpush.bf16.msra.mxu2 %v1673_v58  ;;  %v1624_v24 = vld [vmem:[%s3745_s1 + $0x8] sm:$0xf]  ;;  %v2385_v25 = vld [vmem:[%s3745_s1 + $0x14] sm:$0xf0]  ;;  %v2383_v26 = vld [vmem:[%s3745_s1 + $0xc] sm:$0xf]  ;;  %v1617_v30 = vor.u32 %v2384_v20, %v1616_v17  ;;  %v1621_v34 = vor.u32 %v2382_v21, %v1618_v22 }
  0x16   :  { %274 = vmatpush.bf16.msra.mxu3 %v1677_v62  ;;  %v1626_v27 = vld [vmem:[%s3745_s1 + $0x18] sm:$0xf0]  ;;  %v1856_v28 = vld [vmem:[%s3747_s3 + $0xe0] sm:$0xf]  ;;  %v2444_v29 = vld [vmem:[%s3747_s3 + $0xec] sm:$0xf0]  ;;  %v1625_v35 = vor.u32 %v2385_v25, %v1624_v24 }
  0x17   :  { %v27_v31 = vld [vmem:[%s3744_s0] sm:$0xff]  ;;  %v2476_v33 = vld [vmem:[%s3747_s3 + $0x1ec] sm:$0xf0]  ;;  %v1629_v36 = vor.u32 %v2383_v26, %v1626_v27  ;;  %v1857_v37 = vor.u32 %v2444_v29, %v1856_v28 }
  0x18   :  { %236 = vmatpush.bf16.msra.mxu0 %v1649_v4  ;;  %v1984_v32 = vld [vmem:[%s3747_s3 + $0x1e0] sm:$0xf]  ;;  %v2508_v40 = vld [vmem:[%s3747_s3 + $0x2ec] sm:$0xf0]  ;;  %v28_v41 = vpack.c.bf16 %v27_v31, %v27_v31 }
  0x19   :  { %249 = vmatpush.bf16.msra.mxu1 %v1653_v5  ;;  %262 = vmatpush.bf16.msra.mxu2 %v1657_v6  ;;  %v1840_v38 = vld [vmem:[%s3747_s3 + $0xc0] sm:$0xf]  ;;  %v1985_v42 = vor.u32 %v2476_v33, %v1984_v32  ;;  %v2440_v43 = vld [vmem:[%s3747_s3 + $0xcc] sm:$0xf0] }
  0x1a   :  { %275 = vmatpush.bf16.msra.mxu3 %v1661_v10  ;;  %v2112_v39 = vld [vmem:[%s3747_s3 + $0x2e0] sm:$0xf]  ;;  %v2540_v45 = vld [vmem:[%s3747_s3 + $0x3ec] sm:$0xf0]  ;;  %v1841_v49 = vor.u32 %v2440_v43, %v1840_v38 }
  0x1b   :  { %v2240_v44 = vld [vmem:[%s3747_s3 + $0x3e0] sm:$0xf]  ;;  %v2472_v47 = vld [vmem:[%s3747_s3 + $0x1cc] sm:$0xf0]  ;;  %v2113_v48 = vor.u32 %v2508_v40, %v2112_v39 }
  0x1c   :  { %237 = vmatpush.bf16.msra.mxu0 %v1633_v16  ;;  %v1968_v46 = vld [vmem:[%s3747_s3 + $0x1c0] sm:$0xf]  ;;  %v2241_v50 = vor.u32 %v2540_v45, %v2240_v44  ;;  %v2504_v53 = vld [vmem:[%s3747_s3 + $0x2cc] sm:$0xf0] }
  0x1d   :  { %250 = vmatpush.bf16.msra.mxu1 %v1637_v18  ;;  %263 = vmatpush.bf16.msra.mxu2 %v1641_v19  ;;  %v1824_v51 = vld [vmem:[%s3747_s3 + $0xa0] sm:$0xf]  ;;  %v1969_v54 = vor.u32 %v2472_v47, %v1968_v46  ;;  %v2436_v55 = vld [vmem:[%s3747_s3 + $0xac] sm:$0xf0] }
  0x1e   :  { %276 = vmatpush.bf16.msra.mxu3 %v1645_v23  ;;  %v2096_v52 = vld [vmem:[%s3747_s3 + $0x2c0] sm:$0xf]  ;;  %v2536_v57 = vld [vmem:[%s3747_s3 + $0x3cc] sm:$0xf0]  ;;  %v1825_v61 = vor.u32 %v2436_v55, %v1824_v51 }
  0x1f   :  { %v2224_v56 = vld [vmem:[%s3747_s3 + $0x3c0] sm:$0xf]  ;;  %v2468_v59 = vld [vmem:[%s3747_s3 + $0x1ac] sm:$0xf0]  ;;  %v2097_v60 = vor.u32 %v2504_v53, %v2096_v52 }
  0x20   :  { %238 = vmatpush.bf16.msra.mxu0 %v1617_v30  ;;  %v1952_v58 = vld [vmem:[%s3747_s3 + $0x1a0] sm:$0xf]  ;;  %v2225_v62 = vor.u32 %v2536_v57, %v2224_v56  ;;  %v2500_v1 = vld [vmem:[%s3747_s3 + $0x2ac] sm:$0xf0]  ;;  %v2442_v56 = vld [vmem:[%s3747_s3 + $0xe4] sm:$0xf] }
  0x21   :  { %251 = vmatpush.bf16.msra.mxu1 %v1621_v34  ;;  %264 = vmatpush.bf16.msra.mxu2 %v1625_v35  ;;  %v1808_v63 = vld [vmem:[%s3747_s3 + $0x80] sm:$0xf]  ;;  %v1953_v2 = vor.u32 %v2468_v59, %v1952_v58  ;;  %v2432_v3 = vld [vmem:[%s3747_s3 + $0x8c] sm:$0xf0]  ;;  %v1858_v57 = vld [vmem:[%s3747_s3 + $0xf0] sm:$0xf0] }
  0x22   :  { %277 = vmatpush.bf16.msra.mxu3 %v1629_v36  ;;  %v2080_v0 = vld [vmem:[%s3747_s3 + $0x2a0] sm:$0xf]  ;;  %v2532_v5 = vld [vmem:[%s3747_s3 + $0x3ac] sm:$0xf0]  ;;  %v1809_v9 = vor.u32 %v2432_v3, %v1808_v63  ;;  %v2474_v58 = vld [vmem:[%s3747_s3 + $0x1e4] sm:$0xf] }
  0x23   :  { %239 = vmatmul.bf16.vlgmr.msra.gmra.mxu0 %v28_v41  ;;  %v2208_v4 = vld [vmem:[%s3747_s3 + $0x3a0] sm:$0xf]  ;;  %v2464_v7 = vld [vmem:[%s3747_s3 + $0x18c] sm:$0xf0]  ;;  %v2081_v8 = vor.u32 %v2500_v1, %v2080_v0  ;;  %v1986_v59 = vld [vmem:[%s3747_s3 + $0x1f0] sm:$0xf0] }
  0x24   :  { %1069 = vmatpush.bf16.msrb.mxu0 %v1857_v37  ;;  %252 = vmatmul.bf16.vlgmr.msra.gmra.mxu1 %v28_v41  ;;  %v1936_v6 = vld [vmem:[%s3747_s3 + $0x180] sm:$0xf]  ;;  %v2209_v10 = vor.u32 %v2532_v5, %v2208_v4  ;;  %v2496_v13 = vld [vmem:[%s3747_s3 + $0x28c] sm:$0xf0]  ;;  %v2438_v0 = vld [vmem:[%s3747_s3 + $0xc4] sm:$0xf] }
  0x25   :  { %1082 = vmatpush.bf16.msrb.mxu1 %v1985_v42  ;;  %265 = vmatmul.bf16.vlgmr.msra.gmra.mxu2 %v28_v41  ;;  %v1792_v11 = vld [vmem:[%s3747_s3 + $0x60] sm:$0xf]  ;;  %v1937_v14 = vor.u32 %v2464_v7, %v1936_v6  ;;  %v2428_v15 = vld [vmem:[%s3747_s3 + $0x6c] sm:$0xf0] }
  0x26   :  { %278 = vmatmul.bf16.vlgmr.msra.gmra.mxu3 %v28_v41  ;;  %1095 = vmatpush.bf16.msrb.mxu2 %v2113_v48  ;;  %v2064_v12 = vld [vmem:[%s3747_s3 + $0x280] sm:$0xf]  ;;  %v2528_v17 = vld [vmem:[%s3747_s3 + $0x38c] sm:$0xf0]  ;;  %v1793_v21 = vor.u32 %v2428_v15, %v1792_v11 }
  0x27   :  { %1108 = vmatpush.bf16.msrb.mxu3 %v2241_v50  ;;  %v2192_v16 = vld [vmem:[%s3747_s3 + $0x380] sm:$0xf]  ;;  %v2460_v19 = vld [vmem:[%s3747_s3 + $0x16c] sm:$0xf0]  ;;  %v2065_v20 = vor.u32 %v2496_v13, %v2064_v12 }
  0x28   :  { %1070 = vmatpush.bf16.msrb.mxu0 %v1841_v49  ;;  %v1920_v18 = vld [vmem:[%s3747_s3 + $0x160] sm:$0xf]  ;;  %v2193_v22 = vor.u32 %v2528_v17, %v2192_v16  ;;  %v2492_v25 = vld [vmem:[%s3747_s3 + $0x26c] sm:$0xf0] }
  0x29   :  { %1083 = vmatpush.bf16.msrb.mxu1 %v1969_v54  ;;  %v1776_v23 = vld [vmem:[%s3747_s3 + $0x40] sm:$0xf]  ;;  %v1921_v26 = vor.u32 %v2460_v19, %v1920_v18  ;;  %v2424_v27 = vld [vmem:[%s3747_s3 + $0x4c] sm:$0xf0] }
  0x2a   :  { %1096 = vmatpush.bf16.msrb.mxu2 %v2097_v60  ;;  %v2048_v24 = vld [vmem:[%s3747_s3 + $0x260] sm:$0xf]  ;;  %v2524_v29 = vld [vmem:[%s3747_s3 + $0x36c] sm:$0xf0]  ;;  %v1777_v33 = vor.u32 %v2424_v27, %v1776_v23 }
  0x2b   :  { %1109 = vmatpush.bf16.msrb.mxu3 %v2225_v62  ;;  %v2176_v28 = vld [vmem:[%s3747_s3 + $0x360] sm:$0xf]  ;;  %v2456_v31 = vld [vmem:[%s3747_s3 + $0x14c] sm:$0xf0]  ;;  %v2049_v32 = vor.u32 %v2492_v25, %v2048_v24 }
  0x2c   :  { %1071 = vmatpush.bf16.msrb.mxu0 %v1825_v61  ;;  %v1904_v30 = vld [vmem:[%s3747_s3 + $0x140] sm:$0xf]  ;;  %v2177_v34 = vor.u32 %v2524_v29, %v2176_v28  ;;  %v2488_v37 = vld [vmem:[%s3747_s3 + $0x24c] sm:$0xf0] }
  0x2d   :  { %1084 = vmatpush.bf16.msrb.mxu1 %v1953_v2  ;;  %v1760_v35 = vld [vmem:[%s3747_s3 + $0x20] sm:$0xf]  ;;  %v1905_v38 = vor.u32 %v2456_v31, %v1904_v30  ;;  %v2420_v39 = vld [vmem:[%s3747_s3 + $0x2c] sm:$0xf0] }
  0x2e   :  { %1097 = vmatpush.bf16.msrb.mxu2 %v2081_v8  ;;  %v2032_v36 = vld [vmem:[%s3747_s3 + $0x240] sm:$0xf]  ;;  %v2520_v41 = vld [vmem:[%s3747_s3 + $0x34c] sm:$0xf0]  ;;  %v1761_v47 = vor.u32 %v2420_v39, %v1760_v35 }
  0x2f   :  { %1110 = vmatpush.bf16.msrb.mxu3 %v2209_v10  ;;  %v2160_v40 = vld [vmem:[%s3747_s3 + $0x340] sm:$0xf]  ;;  %v2452_v43 = vld [vmem:[%s3747_s3 + $0x12c] sm:$0xf0]  ;;  %v2033_v44 = vor.u32 %v2488_v37, %v2032_v36 }
  0x30   :  { %1072 = vmatpush.bf16.msrb.mxu0 %v1809_v9  ;;  %v1888_v42 = vld [vmem:[%s3747_s3 + $0x120] sm:$0xf]  ;;  %v2416_v46 = vld [vmem:[%s3747_s3 + $0xc] sm:$0xf0]  ;;  %v2161_v48 = vor.u32 %v2520_v41, %v2160_v40 }
  0x31   :  { %1085 = vmatpush.bf16.msrb.mxu1 %v1937_v14  ;;  %v1744_v45 = vld [vmem:[%s3747_s3] sm:$0xf]  ;;  %v2484_v51 = vld [vmem:[%s3747_s3 + $0x22c] sm:$0xf0]  ;;  %v1889_v52 = vor.u32 %v2452_v43, %v1888_v42 }
  0x32   :  { %1098 = vmatpush.bf16.msrb.mxu2 %v2065_v20  ;;  %v1872_v49 = vld [vmem:[%s3747_s3 + $0x100] sm:$0xf]  ;;  %v2448_v53 = vld [vmem:[%s3747_s3 + $0x10c] sm:$0xf0]  ;;  %v1745_v62 = vor.u32 %v2416_v46, %v1744_v45 }
  0x33   :  { %1111 = vmatpush.bf16.msrb.mxu3 %v2193_v22  ;;  %v2016_v50 = vld [vmem:[%s3747_s3 + $0x220] sm:$0xf]  ;;  %v2516_v55 = vld [vmem:[%s3747_s3 + $0x32c] sm:$0xf0] }
  0x34   :  { %1073 = vmatpush.bf16.msrb.mxu0 %v1793_v21  ;;  %v2144_v54 = vld [vmem:[%s3747_s3 + $0x320] sm:$0xf]  ;;  %v2017_v60 = vor.u32 %v2484_v51, %v2016_v50  ;;  %v2480_v1 = vld [vmem:[%s3747_s3 + $0x20c] sm:$0xf0] }
  0x35   :  { %1086 = vmatpush.bf16.msrb.mxu1 %v1921_v26  ;;  %v2000_v61 = vld [vmem:[%s3747_s3 + $0x200] sm:$0xf]  ;;  %v2145_v63 = vor.u32 %v2516_v55, %v2144_v54 }
  0x36   :  { %1099 = vmatpush.bf16.msrb.mxu2 %v2049_v32  ;;  %v2128_v2 = vld [vmem:[%s3747_s3 + $0x300] sm:$0xf] }
  0x37   :  { %1112 = vmatpush.bf16.msrb.mxu3 %v2177_v34 }
  0x38   :  { %1074 = vmatpush.bf16.msrb.mxu0 %v1777_v33 }
  0x39   :  { %1087 = vmatpush.bf16.msrb.mxu1 %v1905_v38 }
  0x3a   :  { %1100 = vmatpush.bf16.msrb.mxu2 %v2033_v44 }
  0x3b   :  { %1113 = vmatpush.bf16.msrb.mxu3 %v2161_v48 }
  0x3c   :  { %1075 = vmatpush.bf16.msrb.mxu0 %v1761_v47 }
  0x3d   :  { %12 = vsyncpa [#allocation3], 0  ;;  %1088 = vmatpush.bf16.msrb.mxu1 %v1889_v52  ;;  %v1873_v3 = vor.u32 %v2448_v53, %v1872_v49  ;;  %v1861_v4 = vor.u32 %v2442_v56, %v1858_v57  ;;  %v2512_v5 = vld [vmem:[%s3747_s3 + $0x30c] sm:$0xf0]  ;;  %v2506_v6 = vld [vmem:[%s3747_s3 + $0x2e4] sm:$0xf]  ;;  %v1989_v8 = vor.u32 %v2474_v58, %v1986_v59  ;;  %v2001_v14 = vor.u32 %v2480_v1, %v2000_v61 }
  0x3e   :  { %v2114_v7 = vld [vmem:[%s3747_s3 + $0x2f0] sm:$0xf0]  ;;  %v2538_v10 = vld [vmem:[%s3747_s3 + $0x3e4] sm:$0xf]  ;;  %1101 = vmatpush.bf16.msrb.mxu2 %v2017_v60  ;;  %v2129_v15 = vor.u32 %v2512_v5, %v2128_v2  ;;  %s1605_s8 = sshll.u32 %s3751_s7, 4  ;;  %s1606_s8 = int_to_ptr.hbm [resolvable:$true] %s1605_s8 }
  0x3f   :  { %v1842_v9 = vld [vmem:[%s3747_s3 + $0xd0] sm:$0xf0]  ;;  %v2470_v12 = vld [vmem:[%s3747_s3 + $0x1c4] sm:$0xf]  ;;  %1114 = vmatpush.bf16.msrb.mxu3 %v2145_v63  ;;  %v2117_v16 = vor.u32 %v2506_v6, %v2114_v7 }
  0x40   :  { %v2242_v11 = vld [vmem:[%s3747_s3 + $0x3f0] sm:$0xf0]  ;;  %1076 = vmatpush.bf16.msrb.mxu0 %v1745_v62  ;;  %v1845_v17 = vor.u32 %v2438_v0, %v1842_v9  ;;  %v2434_v19 = vld [vmem:[%s3747_s3 + $0xa4] sm:$0xf] }
  0x41   :  { %v1970_v13 = vld [vmem:[%s3747_s3 + $0x1d0] sm:$0xf0]  ;;  %1089 = vmatpush.bf16.msrb.mxu1 %v1873_v3  ;;  %v2245_v18 = vor.u32 %v2538_v10, %v2242_v11  ;;  %v2502_v20 = vld [vmem:[%s3747_s3 + $0x2c4] sm:$0xf] }
  0x42   :  { %v2098_v21 = vld [vmem:[%s3747_s3 + $0x2d0] sm:$0xf0]  ;;  %v1973_v22 = vor.u32 %v2470_v12, %v1970_v13  ;;  %v2534_v24 = vld [vmem:[%s3747_s3 + $0x3c4] sm:$0xf]  ;;  %1102 = vmatpush.bf16.msrb.mxu2 %v2001_v14 }
  0x43   :  { %v1826_v23 = vld [vmem:[%s3747_s3 + $0xb0] sm:$0xf0]  ;;  %v2466_v26 = vld [vmem:[%s3747_s3 + $0x1a4] sm:$0xf]  ;;  %1115 = vmatpush.bf16.msrb.mxu3 %v2129_v15  ;;  %v2101_v28 = vor.u32 %v2502_v20, %v2098_v21 }
  0x44   :  { %1121 = vmatpush.bf16.msra.mxu0 %v1861_v4  ;;  %v2226_v25 = vld [vmem:[%s3747_s3 + $0x3d0] sm:$0xf0]  ;;  %v1829_v29 = vor.u32 %v2434_v19, %v1826_v23  ;;  %v2430_v31 = vld [vmem:[%s3747_s3 + $0x84] sm:$0xf] }
  0x45   :  { %1134 = vmatpush.bf16.msra.mxu1 %v1989_v8  ;;  %v1954_v27 = vld [vmem:[%s3747_s3 + $0x1b0] sm:$0xf0]  ;;  %v2229_v30 = vor.u32 %v2534_v24, %v2226_v25  ;;  %v2498_v32 = vld [vmem:[%s3747_s3 + $0x2a4] sm:$0xf] }
  0x46   :  { %1147 = vmatpush.bf16.msra.mxu2 %v2117_v16  ;;  %v2082_v33 = vld [vmem:[%s3747_s3 + $0x2b0] sm:$0xf0]  ;;  %v1957_v34 = vor.u32 %v2466_v26, %v1954_v27  ;;  %v2530_v36 = vld [vmem:[%s3747_s3 + $0x3a4] sm:$0xf] }
  0x47   :  { %1160 = vmatpush.bf16.msra.mxu3 %v2245_v18  ;;  %v1810_v35 = vld [vmem:[%s3747_s3 + $0x90] sm:$0xf0]  ;;  %v2462_v38 = vld [vmem:[%s3747_s3 + $0x184] sm:$0xf]  ;;  %v2085_v40 = vor.u32 %v2498_v32, %v2082_v33 }
  0x48   :  { %1122 = vmatpush.bf16.msra.mxu0 %v1845_v17  ;;  %v2210_v37 = vld [vmem:[%s3747_s3 + $0x3b0] sm:$0xf0]  ;;  %v1813_v41 = vor.u32 %v2430_v31, %v1810_v35  ;;  %v2426_v43 = vld [vmem:[%s3747_s3 + $0x64] sm:$0xf] }
  0x49   :  { %1135 = vmatpush.bf16.msra.mxu1 %v1973_v22  ;;  %v1938_v39 = vld [vmem:[%s3747_s3 + $0x190] sm:$0xf0]  ;;  %v2213_v42 = vor.u32 %v2530_v36, %v2210_v37  ;;  %v2494_v44 = vld [vmem:[%s3747_s3 + $0x284] sm:$0xf] }
  0x4a   :  { %1148 = vmatpush.bf16.msra.mxu2 %v2101_v28  ;;  %v2066_v45 = vld [vmem:[%s3747_s3 + $0x290] sm:$0xf0]  ;;  %v1941_v46 = vor.u32 %v2462_v38, %v1938_v39  ;;  %v2526_v48 = vld [vmem:[%s3747_s3 + $0x384] sm:$0xf] }
  0x4b   :  { %1161 = vmatpush.bf16.msra.mxu3 %v2229_v30  ;;  %v1794_v47 = vld [vmem:[%s3747_s3 + $0x70] sm:$0xf0]  ;;  %v2458_v50 = vld [vmem:[%s3747_s3 + $0x164] sm:$0xf]  ;;  %v2069_v52 = vor.u32 %v2494_v44, %v2066_v45  ;;  %v2477_v44 = vld [vmem:[%s3747_s3 + $0x1f4] sm:$0xf0] }
  0x4c   :  { %1123 = vmatpush.bf16.msra.mxu0 %v1829_v29  ;;  %v2194_v49 = vld [vmem:[%s3747_s3 + $0x390] sm:$0xf0]  ;;  %v1797_v53 = vor.u32 %v2426_v43, %v1794_v47  ;;  %v2422_v56 = vld [vmem:[%s3747_s3 + $0x44] sm:$0xf]  ;;  %v1992_v43 = vld [vmem:[%s3747_s3 + $0x1e8] sm:$0xf] }
  0x4d   :  { %1136 = vmatpush.bf16.msra.mxu1 %v1957_v34  ;;  %v1922_v51 = vld [vmem:[%s3747_s3 + $0x170] sm:$0xf0]  ;;  %v2197_v54 = vor.u32 %v2526_v48, %v2194_v49  ;;  %v2454_v58 = vld [vmem:[%s3747_s3 + $0x144] sm:$0xf]  ;;  %v61_v34 = vld [vmem:[%s3746_s2] sm:$0xf] }
  0x4e   :  { %1149 = vmatpush.bf16.msra.mxu2 %v2085_v40  ;;  %v1925_v55 = vor.u32 %v2458_v50, %v1922_v51  ;;  %v1778_v57 = vld [vmem:[%s3747_s3 + $0x50] sm:$0xf0]  ;;  %v2490_v62 = vld [vmem:[%s3747_s3 + $0x264] sm:$0xf]  ;;  %v63_v35 = vperm.slane %v61_v34, 0  ;;  %v64_v36 = vperm.slane %v61_v34, 1  ;;  %v1993_v51 = vor.u32 %v2477_v44, %v1992_v43 }
  0x4f   :  { %1162 = vmatpush.bf16.msra.mxu3 %v2213_v42  ;;  %v1906_v59 = vld [vmem:[%s3747_s3 + $0x150] sm:$0xf0]  ;;  %v1781_v60 = vor.u32 %v2422_v56, %v1778_v57  ;;  %v2522_v0 = vld [vmem:[%s3747_s3 + $0x364] sm:$0xf]  ;;  %v1864_v40 = vld [vmem:[%s3747_s3 + $0xe8] sm:$0xf] }
  0x50   :  { %1124 = vmatpush.bf16.msra.mxu0 %v1813_v41  ;;  %v1909_v61 = vor.u32 %v2454_v58, %v1906_v59  ;;  %v2050_v63 = vld [vmem:[%s3747_s3 + $0x270] sm:$0xf0]  ;;  %v2418_v4 = vld [vmem:[%s3747_s3 + $0x24] sm:$0xf]  ;;  %v2445_v41 = vld [vmem:[%s3747_s3 + $0xf4] sm:$0xf0] }
  0x51   :  { %1137 = vmatpush.bf16.msra.mxu1 %v1941_v46  ;;  %v2053_v1 = vor.u32 %v2490_v62, %v2050_v63  ;;  %v2178_v2 = vld [vmem:[%s3747_s3 + $0x370] sm:$0xf0]  ;;  %v2450_v7 = vld [vmem:[%s3747_s3 + $0x124] sm:$0xf]  ;;  %v65_v47 = vperm.slane %v61_v34, 2  ;;  %v1865_v48 = vor.u32 %v2445_v41, %v1864_v40  ;;  %v66_v50 = vperm.slane %v61_v34, 3 }
  0x52   :  { %1150 = vmatpush.bf16.msra.mxu2 %v2069_v52  ;;  %v2181_v3 = vor.u32 %v2522_v0, %v2178_v2  ;;  %v1762_v5 = vld [vmem:[%s3747_s3 + $0x30] sm:$0xf0]  ;;  %v2486_v10 = vld [vmem:[%s3747_s3 + $0x244] sm:$0xf]  ;;  %v1848_v52 = vld [vmem:[%s3747_s3 + $0xc8] sm:$0xf] }
  0x53   :  { %1163 = vmatpush.bf16.msra.mxu3 %v2197_v54  ;;  %v1765_v6 = vor.u32 %v2418_v4, %v1762_v5  ;;  %v1890_v8 = vld [vmem:[%s3747_s3 + $0x130] sm:$0xf0]  ;;  %v2518_v12 = vld [vmem:[%s3747_s3 + $0x344] sm:$0xf]  ;;  %v2473_v56 = vld [vmem:[%s3747_s3 + $0x1d4] sm:$0xf0] }
  0x54   :  { %1125 = vmatpush.bf16.msra.mxu0 %v1797_v53  ;;  %v1893_v9 = vor.u32 %v2450_v7, %v1890_v8  ;;  %v2034_v11 = vld [vmem:[%s3747_s3 + $0x250] sm:$0xf0]  ;;  %v2414_v16 = vld [vmem:[%s3747_s3 + $0x4] sm:$0xf]  ;;  %v2441_v53 = vld [vmem:[%s3747_s3 + $0xd4] sm:$0xf0] }
  0x55   :  { %1138 = vmatpush.bf16.msra.mxu1 %v1925_v55  ;;  %v2037_v13 = vor.u32 %v2486_v10, %v2034_v11  ;;  %v2162_v14 = vld [vmem:[%s3747_s3 + $0x350] sm:$0xf0]  ;;  %v2446_v18 = vld [vmem:[%s3747_s3 + $0x104] sm:$0xf]  ;;  %v1976_v55 = vld [vmem:[%s3747_s3 + $0x1c8] sm:$0xf] }
  0x56   :  { %1151 = vmatpush.bf16.msra.mxu2 %v2053_v1  ;;  %v2165_v15 = vor.u32 %v2518_v12, %v2162_v14  ;;  %v1746_v17 = vld [vmem:[%s3747_s3 + $0x10] sm:$0xf0]  ;;  %v2482_v22 = vld [vmem:[%s3747_s3 + $0x224] sm:$0xf]  ;;  %v2120_v62 = vld [vmem:[%s3747_s3 + $0x2e8] sm:$0xf] }
  0x57   :  { %1164 = vmatpush.bf16.msra.mxu3 %v2181_v3  ;;  %v1749_v19 = vor.u32 %v2414_v16, %v1746_v17  ;;  %v1874_v20 = vld [vmem:[%s3747_s3 + $0x110] sm:$0xf0]  ;;  %v2514_v25 = vld [vmem:[%s3747_s3 + $0x324] sm:$0xf]  ;;  %v2509_v63 = vld [vmem:[%s3747_s3 + $0x2f4] sm:$0xf0]  ;;  %v1977_v3 = vor.u32 %v2473_v56, %v1976_v55 }
  0x58   :  { %1126 = vmatpush.bf16.msra.mxu0 %v1781_v60  ;;  %v1877_v21 = vor.u32 %v2446_v18, %v1874_v20  ;;  %v2018_v23 = vld [vmem:[%s3747_s3 + $0x230] sm:$0xf0]  ;;  %v2478_v28 = vld [vmem:[%s3747_s3 + $0x204] sm:$0xf]  ;;  %v2248_v0 = vld [vmem:[%s3747_s3 + $0x3e8] sm:$0xf]  ;;  %v2121_v11 = vor.u32 %v2509_v63, %v2120_v62 }
  0x59   :  { %1139 = vmatpush.bf16.msra.mxu1 %v1909_v61  ;;  %v2021_v24 = vor.u32 %v2482_v22, %v2018_v23  ;;  %v2146_v26 = vld [vmem:[%s3747_s3 + $0x330] sm:$0xf0]  ;;  %v2510_v31 = vld [vmem:[%s3747_s3 + $0x304] sm:$0xf]  ;;  %v1849_v61 = vor.u32 %v2441_v53, %v1848_v52  ;;  %v2541_v4 = vld [vmem:[%s3747_s3 + $0x3f4] sm:$0xf0] }
  0x5a   :  { %1152 = vmatpush.bf16.msra.mxu2 %v2037_v13  ;;  %v2149_v27 = vor.u32 %v2514_v25, %v2146_v26  ;;  %v2002_v29 = vld [vmem:[%s3747_s3 + $0x210] sm:$0xf0]  ;;  %v1832_v5 = vld [vmem:[%s3747_s3 + $0xa8] sm:$0xf]  ;;  %v2249_v13 = vor.u32 %v2541_v4, %v2248_v0  ;;  %v2505_v16 = vld [vmem:[%s3747_s3 + $0x2d4] sm:$0xf0] }
  0x5b   :  { %1165 = vmatpush.bf16.msra.mxu3 %v2165_v15  ;;  %v2005_v30 = vor.u32 %v2478_v28, %v2002_v29  ;;  %v2130_v32 = vld [vmem:[%s3747_s3 + $0x310] sm:$0xf0]  ;;  %v1960_v8 = vld [vmem:[%s3747_s3 + $0x1a8] sm:$0xf]  ;;  %v2537_v20 = vld [vmem:[%s3747_s3 + $0x3d4] sm:$0xf0] }
  0x5c   :  { %1127 = vmatpush.bf16.msra.mxu0 %v1765_v6  ;;  %v2133_v33 = vor.u32 %v2510_v31, %v2130_v32  ;;  %v2437_v6 = vld [vmem:[%s3747_s3 + $0xb4] sm:$0xf0]  ;;  %v2104_v15 = vld [vmem:[%s3747_s3 + $0x2c8] sm:$0xf]  ;;  %s2602_s2 = smov [#allocation2]  }
  0x5d   :  { %1140 = vmatpush.bf16.msra.mxu1 %v1893_v9  ;;  %v2469_v9 = vld [vmem:[%s3747_s3 + $0x1b4] sm:$0xf0]  ;;  %v1833_v14 = vor.u32 %v2437_v6, %v1832_v5  ;;  %v2232_v17 = vld [vmem:[%s3747_s3 + $0x3c8] sm:$0xf]  ;;  %v2105_v26 = vor.u32 %v2505_v16, %v2104_v15  ;;  %v1866_v16 = vld [vmem:[%s3747_s3 + $0xf8] sm:$0xf0] }
  0x5e   :  { %1153 = vmatpush.bf16.msra.mxu2 %v2021_v24  ;;  %v2433_v22 = vld [vmem:[%s3747_s3 + $0x94] sm:$0xf0]  ;;  %v1944_v23 = vld [vmem:[%s3747_s3 + $0x188] sm:$0xf]  ;;  %v2233_v28 = vor.u32 %v2537_v20, %v2232_v17  ;;  %v2475_v17 = vld [vmem:[%s3747_s3 + $0x1ec] sm:$0xf] }
  0x5f   :  { %1166 = vmatpush.bf16.msra.mxu3 %v2149_v27  ;;  %v2465_v24 = vld [vmem:[%s3747_s3 + $0x194] sm:$0xf0]  ;;  %v2072_v41 = vld [vmem:[%s3747_s3 + $0x288] sm:$0xf] }
  0x60   :  { %1128 = vmatpush.bf16.msra.mxu0 %v1749_v19  ;;  %v1961_v19 = vor.u32 %v2469_v9, %v1960_v8  ;;  %v2501_v31 = vld [vmem:[%s3747_s3 + $0x2b4] sm:$0xf0]  ;;  %v1945_v32 = vor.u32 %v2465_v24, %v1944_v23  ;;  %v2056_v55 = vld [vmem:[%s3747_s3 + $0x268] sm:$0xf] }
  0x61   :  { %1141 = vmatpush.bf16.msra.mxu1 %v1877_v21  ;;  %v1816_v21 = vld [vmem:[%s3747_s3 + $0x88] sm:$0xf]  ;;  %v2533_v34 = vld [vmem:[%s3747_s3 + $0x3b4] sm:$0xf0] }
  0x62   :  { %1154 = vmatpush.bf16.msra.mxu2 %v2005_v30  ;;  %v1817_v29 = vor.u32 %v2433_v22, %v1816_v21  ;;  %v2088_v30 = vld [vmem:[%s3747_s3 + $0x2a8] sm:$0xf]  ;;  %v2493_v56 = vld [vmem:[%s3747_s3 + $0x274] sm:$0xf0] }
  0x63   :  { %1167 = vmatpush.bf16.msra.mxu3 %v2133_v33  ;;  %v2216_v33 = vld [vmem:[%s3747_s3 + $0x3a8] sm:$0xf]  ;;  %v2421_v62 = vld [vmem:[%s3747_s3 + $0x34] sm:$0xf0] }
  0x64   :  { %v2217_v40 = vor.u32 %v2533_v34, %v2216_v33  ;;  %v1896_v63 = vld [vmem:[%s3747_s3 + $0x128] sm:$0xf]  ;;  %v2453_v0 = vld [vmem:[%s3747_s3 + $0x134] sm:$0xf0]  ;;  %v1978_v33 = vld [vmem:[%s3747_s3 + $0x1d8] sm:$0xf0] }
  0x65   :  { %v2489_v4 = vld [vmem:[%s3747_s3 + $0x254] sm:$0xf0]  ;;  %v2168_v5 = vld [vmem:[%s3747_s3 + $0x348] sm:$0xf] }
  0x66   :  { %v2521_v8 = vld [vmem:[%s3747_s3 + $0x354] sm:$0xf0]  ;;  %v1752_v9 = vld [vmem:[%s3747_s3 + $0x8] sm:$0xf] }
  0x67   :  { %v2169_v20 = vor.u32 %v2521_v8, %v2168_v5  ;;  %v2024_v21 = vld [vmem:[%s3747_s3 + $0x228] sm:$0xf]  ;;  %v2485_v22 = vld [vmem:[%s3747_s3 + $0x234] sm:$0xf0]  ;;  %v2218_v8 = vld [vmem:[%s3747_s3 + $0x3b8] sm:$0xf0] }
  0xa0   :  { %v240_v37 = vpop.f32.mrf.mxu0 }
  0xa1   :  { %v241_v38 = vadd.f32 %v240_v37, %v63_v35  ;;  %v253_v39 = vpop.f32.mrf.mxu1  ;;  %v1800_v35 = vld [vmem:[%s3747_s3 + $0x68] sm:$0xf] }
  0xa2   :  { %v254_v42 = vadd.f32 %v253_v39, %v64_v36  ;;  %v2429_v36 = vld [vmem:[%s3747_s3 + $0x74] sm:$0xf0]  ;;  %v1928_v37 = vld [vmem:[%s3747_s3 + $0x168] sm:$0xf]  ;;  %v2089_v39 = vor.u32 %v2501_v31, %v2088_v30  ;;  %v2025_v30 = vor.u32 %v2485_v22, %v2024_v21  ;;  %v1850_v31 = vld [vmem:[%s3747_s3 + $0xd8] sm:$0xf0] }
  0xa3   :  { %v283_v45 = vmax.f32 %v241_v38, 0.0  ;;  %v2461_v38 = vld [vmem:[%s3747_s3 + $0x174] sm:$0xf0]  ;;  %v1801_v43 = vor.u32 %v2429_v36, %v1800_v35  ;;  %v2008_v35 = vld [vmem:[%s3747_s3 + $0x208] sm:$0xf] }
  0xa4   :  { %v284_v46 = vmax.f32 %v254_v42, 0.0  ;;  %v2497_v42 = vld [vmem:[%s3747_s3 + $0x294] sm:$0xf0]  ;;  %v1929_v44 = vor.u32 %v2461_v38, %v1928_v37  ;;  %v2136_v37 = vld [vmem:[%s3747_s3 + $0x308] sm:$0xf] }
  0xa5   :  { %v3237_v49 = vpack.c.bf16 %v283_v45, %v283_v45  ;;  %v2200_v45 = vld [vmem:[%s3747_s3 + $0x388] sm:$0xf]  ;;  %v2073_v52 = vor.u32 %v2497_v42, %v2072_v41  ;;  %v2481_v36 = vld [vmem:[%s3747_s3 + $0x214] sm:$0xf0]  ;;  %v2527_v21 = vld [vmem:[%s3747_s3 + $0x38c] sm:$0xf] }
  0xa6   :  { %v3245_v54 = vpack.c.bf16 %v284_v46, %v284_v46  ;;  %v2529_v46 = vld [vmem:[%s3747_s3 + $0x394] sm:$0xf0]  ;;  %v2202_v22 = vld [vmem:[%s3747_s3 + $0x398] sm:$0xf0] }
  0xa7   :  { %1077 = vmatmul.bf16.vlgmr.msrb.gmra.mxu0 %v3237_v49  ;;  %v2201_v53 = vor.u32 %v2529_v46, %v2200_v45  ;;  %v2513_v38 = vld [vmem:[%s3747_s3 + $0x314] sm:$0xf0]  ;;  %v2435_v45 = vld [vmem:[%s3747_s3 + $0xac] sm:$0xf]  ;;  %v2009_v46 = vor.u32 %v2481_v36, %v2008_v35  ;;  %v1770_v36 = vld [vmem:[%s3747_s3 + $0x38] sm:$0xf0] }
  0xa8   :  { %v266_v57 = vpop.f32.mrf.mxu2  ;;  %1090 = vmatmul.bf16.vlgmr.msrb.gmra.mxu1 %v3245_v54  ;;  %1173 = vmatpush.bf16.msrb.mxu0 %v1865_v48  ;;  %v242_v60 = vpop.f32.mrf.mxu0  ;;  %v2425_v48 = vld [vmem:[%s3747_s3 + $0x54] sm:$0xf0]  ;;  %v2419_v35 = vld [vmem:[%s3747_s3 + $0x2c] sm:$0xf] }
  0xa9   :  { %v267_v58 = vadd.f32 %v266_v57, %v65_v47  ;;  %v279_v59 = vpop.f32.mrf.mxu3  ;;  %1186 = vmatpush.bf16.msrb.mxu1 %v1993_v51  ;;  %v255_v2 = vpop.f32.mrf.mxu1  ;;  %v1784_v47 = vld [vmem:[%s3747_s3 + $0x48] sm:$0xf]  ;;  %v2457_v51 = vld [vmem:[%s3747_s3 + $0x154] sm:$0xf0] }
  0xaa   :  { %v280_v1 = vadd.f32 %v279_v59, %v66_v50  ;;  %v1912_v50 = vld [vmem:[%s3747_s3 + $0x148] sm:$0xf]  ;;  %v1785_v57 = vor.u32 %v2425_v48, %v1784_v47  ;;  %v2525_v60 = vld [vmem:[%s3747_s3 + $0x374] sm:$0xf0]  ;;  %v1834_v47 = vld [vmem:[%s3747_s3 + $0xb8] sm:$0xf0] }
  0xab   :  { %v285_v7 = vmax.f32 %v267_v58, 0.0  ;;  %v1913_v58 = vor.u32 %v2457_v51, %v1912_v50  ;;  %v2184_v59 = vld [vmem:[%s3747_s3 + $0x368] sm:$0xf]  ;;  %v2467_v48 = vld [vmem:[%s3747_s3 + $0x1ac] sm:$0xf]  ;;  %v2137_v51 = vor.u32 %v2513_v38, %v2136_v37 }
  0xac   :  { %v286_v10 = vmax.f32 %v280_v1, 0.0  ;;  %1174 = vmatpush.bf16.msrb.mxu0 %v1849_v61  ;;  %v1768_v61 = vld [vmem:[%s3747_s3 + $0x28] sm:$0xf]  ;;  %v2057_v1 = vor.u32 %v2493_v56, %v2056_v55  ;;  %v2185_v2 = vor.u32 %v2525_v60, %v2184_v59  ;;  %v1962_v50 = vld [vmem:[%s3747_s3 + $0x1b8] sm:$0xf0] }
  0xad   :  { %v3279_v12 = vpack.c.bf16 %v285_v7, %v285_v7  ;;  %1187 = vmatpush.bf16.msrb.mxu1 %v1977_v3  ;;  %v2040_v3 = vld [vmem:[%s3747_s3 + $0x248] sm:$0xf]  ;;  %v1769_v6 = vor.u32 %v2421_v62, %v1768_v61  ;;  %v1897_v7 = vor.u32 %v2453_v0, %v1896_v63  ;;  %v2503_v55 = vld [vmem:[%s3747_s3 + $0x2cc] sm:$0xf]  ;;  %v2106_v56 = vld [vmem:[%s3747_s3 + $0x2d8] sm:$0xf0] }
  0xae   :  { %v3290_v18 = vpack.c.bf16 %v286_v10, %v286_v10  ;;  %v2417_v10 = vld [vmem:[%s3747_s3 + $0x14] sm:$0xf0]  ;;  %v2041_v15 = vor.u32 %v2489_v4, %v2040_v3  ;;  %v2535_v59 = vld [vmem:[%s3747_s3 + $0x3cc] sm:$0xf]  ;;  %v2234_v60 = vld [vmem:[%s3747_s3 + $0x3d8] sm:$0xf0] }
  0xaf   :  { %1103 = vmatmul.bf16.vlgmr.msrb.gmra.mxu2 %v3279_v12  ;;  %v1753_v23 = vor.u32 %v2417_v10, %v1752_v9  ;;  %v2431_v61 = vld [vmem:[%s3747_s3 + $0x8c] sm:$0xf]  ;;  %v1818_v62 = vld [vmem:[%s3747_s3 + $0x98] sm:$0xf0] }
  0xb0   :  { %1116 = vmatmul.bf16.vlgmr.msrb.gmra.mxu3 %v3290_v18  ;;  %1199 = vmatpush.bf16.msrb.mxu2 %v2121_v11  ;;  %v268_v25 = vpop.f32.mrf.mxu2  ;;  %v1880_v11 = vld [vmem:[%s3747_s3 + $0x108] sm:$0xf]  ;;  %v2463_v63 = vld [vmem:[%s3747_s3 + $0x18c] sm:$0xf]  ;;  %v1946_v0 = vld [vmem:[%s3747_s3 + $0x198] sm:$0xf0]  ;;  %v1821_v5 = vor.u32 %v2431_v61, %v1818_v62 }
  0xb1   :  { %1212 = vmatpush.bf16.msrb.mxu3 %v2249_v13  ;;  %v281_v27 = vpop.f32.mrf.mxu3  ;;  %1175 = vmatpush.bf16.msrb.mxu0 %v1833_v14  ;;  %v2449_v13 = vld [vmem:[%s3747_s3 + $0x114] sm:$0xf0]  ;;  %v2443_v14 = vld [vmem:[%s3747_s3 + $0xec] sm:$0xf]  ;;  %v2152_v25 = vld [vmem:[%s3747_s3 + $0x328] sm:$0xf] }
  0xb2   :  { %1188 = vmatpush.bf16.msrb.mxu1 %v1961_v19  ;;  %v1994_v19 = vld [vmem:[%s3747_s3 + $0x1f8] sm:$0xf0]  ;;  %v1881_v24 = vor.u32 %v2449_v13, %v1880_v11  ;;  %v1869_v27 = vor.u32 %v2443_v14, %v1866_v16  ;;  %v2499_v3 = vld [vmem:[%s3747_s3 + $0x2ac] sm:$0xf] }
  0xb3   :  { %v2090_v4 = vld [vmem:[%s3747_s3 + $0x2b8] sm:$0xf0]  ;;  %v2427_v9 = vld [vmem:[%s3747_s3 + $0x6c] sm:$0xf] }
  0xb4   :  { %1200 = vmatpush.bf16.msrb.mxu2 %v2105_v26  ;;  %v2517_v26 = vld [vmem:[%s3747_s3 + $0x334] sm:$0xf0]  ;;  %v1802_v10 = vld [vmem:[%s3747_s3 + $0x78] sm:$0xf0]  ;;  %v2459_v11 = vld [vmem:[%s3747_s3 + $0x16c] sm:$0xf]  ;;  %v2093_v14 = vor.u32 %v2499_v3, %v2090_v4 }
  0xb5   :  { %1213 = vmatpush.bf16.msrb.mxu3 %v2233_v28  ;;  %1176 = vmatpush.bf16.msrb.mxu0 %v1817_v29  ;;  %v1997_v28 = vor.u32 %v2475_v17, %v1994_v19  ;;  %v2439_v29 = vld [vmem:[%s3747_s3 + $0xcc] sm:$0xf]  ;;  %v2153_v34 = vor.u32 %v2517_v26, %v2152_v25  ;;  %v1930_v13 = vld [vmem:[%s3747_s3 + $0x178] sm:$0xf0]  ;;  %v1805_v19 = vor.u32 %v2427_v9, %v1802_v10  ;;  %v2548_v4 = vld [vmem:[%s3749_s5 + $0x30] sm:$0xff] }
  0xb6   :  { %1189 = vmatpush.bf16.msrb.mxu1 %v1945_v32  ;;  %v2471_v32 = vld [vmem:[%s3747_s3 + $0x1cc] sm:$0xf]  ;;  %v1853_v41 = vor.u32 %v2439_v29, %v1850_v31  ;;  %v2074_v17 = vld [vmem:[%s3747_s3 + $0x298] sm:$0xf0] }
  0xb7   :  { %1129 = vmatmul.bf16.vlgmr.msra.gmra.mxu0 %v3237_v49  ;;  %v1981_v42 = vor.u32 %v2471_v32, %v1978_v33  ;;  %v2495_v16 = vld [vmem:[%s3747_s3 + $0x28c] sm:$0xf]  ;;  %v1914_v26 = vld [vmem:[%s3747_s3 + $0x158] sm:$0xf0] }
  0xb8   :  { %1201 = vmatpush.bf16.msrb.mxu2 %v2089_v39  ;;  %1142 = vmatmul.bf16.vlgmr.msra.gmra.mxu1 %v3245_v54  ;;  %v2507_v39 = vld [vmem:[%s3747_s3 + $0x2ec] sm:$0xf]  ;;  %v1898_v38 = vld [vmem:[%s3747_s3 + $0x138] sm:$0xf0] }
  0xb9   :  { %1214 = vmatpush.bf16.msrb.mxu3 %v2217_v40  ;;  %1177 = vmatpush.bf16.msrb.mxu0 %v1801_v43  ;;  %v2122_v40 = vld [vmem:[%s3747_s3 + $0x2f8] sm:$0xf0]  ;;  %v2539_v43 = vld [vmem:[%s3747_s3 + $0x3ec] sm:$0xf] }
  0xba   :  { %1190 = vmatpush.bf16.msrb.mxu1 %v1929_v44  ;;  %v2250_v44 = vld [vmem:[%s3747_s3 + $0x3f8] sm:$0xf0]  ;;  %v2455_v25 = vld [vmem:[%s3747_s3 + $0x14c] sm:$0xf] }
  0xbb   :  { %v2491_v29 = vld [vmem:[%s3747_s3 + $0x26c] sm:$0xf]  ;;  %v1917_v32 = vor.u32 %v2455_v25, %v1914_v26  ;;  %v2549_v61 = vld [vmem:[%s3749_s5 + $0x38] sm:$0xff]  ;;  %v2550_v25 = vld [vmem:[%s3749_s5 + $0x40] sm:$0xff] }
  0xbc   :  { %1202 = vmatpush.bf16.msrb.mxu2 %v2073_v52  ;;  %v2125_v52 = vor.u32 %v2507_v39, %v2122_v40  ;;  %v2523_v33 = vld [vmem:[%s3747_s3 + $0x36c] sm:$0xf]  ;;  %v2138_v3 = vld [vmem:[%s3747_s3 + $0x318] sm:$0xf0]  ;;  %v2562_v26 = vld [vmem:[%s3749_s5 + $0xa0] sm:$0xff] }
  0xbd   :  { %1215 = vmatpush.bf16.msrb.mxu3 %v2201_v53  ;;  %1178 = vmatpush.bf16.msrb.mxu0 %v1785_v57  ;;  %v2253_v53 = vor.u32 %v2539_v43, %v2250_v44  ;;  %v1837_v57 = vor.u32 %v2435_v45, %v1834_v47  ;;  %v2451_v37 = vld [vmem:[%s3747_s3 + $0x12c] sm:$0xf]  ;;  %v1773_v43 = vor.u32 %v2419_v35, %v1770_v36 }
  0xbe   :  { %1191 = vmatpush.bf16.msrb.mxu1 %v1913_v58  ;;  %v1965_v58 = vor.u32 %v2467_v48, %v1962_v50  ;;  %v1901_v44 = vor.u32 %v2451_v37, %v1898_v38  ;;  %v2519_v45 = vld [vmem:[%s3747_s3 + $0x34c] sm:$0xf]  ;;  %v1754_v48 = vld [vmem:[%s3747_s3 + $0x18] sm:$0xf0] }
  0xbf   :  { %1155 = vmatmul.bf16.vlgmr.msra.gmra.mxu2 %v3279_v12  ;;  %v2415_v47 = vld [vmem:[%s3747_s3 + $0xc] sm:$0xf] }
  0xc0   :  { %1168 = vmatmul.bf16.vlgmr.msra.gmra.mxu3 %v3290_v18  ;;  %1203 = vmatpush.bf16.msrb.mxu2 %v2057_v1  ;;  %v2109_v1 = vor.u32 %v2503_v55, %v2106_v56  ;;  %v2447_v50 = vld [vmem:[%s3747_s3 + $0x10c] sm:$0xf]  ;;  %v2026_v56 = vld [vmem:[%s3747_s3 + $0x238] sm:$0xf0] }
  0xc1   :  { %1216 = vmatpush.bf16.msrb.mxu3 %v2185_v2  ;;  %1179 = vmatpush.bf16.msrb.mxu0 %v1769_v6  ;;  %v2237_v2 = vor.u32 %v2535_v59, %v2234_v60  ;;  %v1949_v6 = vor.u32 %v2463_v63, %v1946_v0  ;;  %v2483_v55 = vld [vmem:[%s3747_s3 + $0x22c] sm:$0xf]  ;;  %v2154_v60 = vld [vmem:[%s3747_s3 + $0x338] sm:$0xf0] }
  0xc2   :  { %1192 = vmatpush.bf16.msrb.mxu1 %v1897_v7  ;;  %v2531_v7 = vld [vmem:[%s3747_s3 + $0x3ac] sm:$0xf]  ;;  %v2029_v62 = vor.u32 %v2483_v55, %v2026_v56 }
  0xc3   :  { %v2515_v59 = vld [vmem:[%s3747_s3 + $0x32c] sm:$0xf] }
  0xc4   :  { %1204 = vmatpush.bf16.msrb.mxu2 %v2041_v15  ;;  %v2221_v15 = vor.u32 %v2531_v7, %v2218_v8  ;;  %v2157_v63 = vor.u32 %v2515_v59, %v2154_v60  ;;  %v2479_v0 = vld [vmem:[%s3747_s3 + $0x20c] sm:$0xf]  ;;  %v2546_v8 = vld [vmem:[%s3749_s5 + $0x20] sm:$0xff] }
  0xc5   :  { %1217 = vmatpush.bf16.msrb.mxu3 %v2169_v20  ;;  %1180 = vmatpush.bf16.msrb.mxu0 %v1753_v23  ;;  %v1933_v20 = vor.u32 %v2459_v11, %v1930_v13  ;;  %v2423_v23 = vld [vmem:[%s3747_s3 + $0x4c] sm:$0xf]  ;;  %v2542_v11 = vld [vmem:[%s3749_s5] sm:$0xff] }
  0xc6   :  { %1193 = vmatpush.bf16.msrb.mxu1 %v1881_v24  ;;  %v1786_v24 = vld [vmem:[%s3747_s3 + $0x58] sm:$0xf0]  ;;  %v2547_v7 = vld [vmem:[%s3749_s5 + $0x28] sm:$0xff]  ;;  %v2554_v13 = vld [vmem:[%s3749_s5 + $0x60] sm:$0xff] }
  0xc7   :  { %v1789_v31 = vor.u32 %v2423_v23, %v1786_v24  ;;  %v2543_v9 = vld [vmem:[%s3749_s5 + $0x8] sm:$0xff] }
  0xc8   :  { %1205 = vmatpush.bf16.msrb.mxu2 %v2025_v30  ;;  %1181 = vmatmul.bf16.vlgmr.msrb.gmra.mxu0 %v3237_v49  ;;  %v2058_v30 = vld [vmem:[%s3747_s3 + $0x278] sm:$0xf0]  ;;  %v2555_v10 = vld [vmem:[%s3749_s5 + $0x68] sm:$0xff] }
  0xc9   :  { %1225 = vmatpush.bf16.msra.mxu0 %v1869_v27  ;;  %1218 = vmatpush.bf16.msrb.mxu3 %v2153_v34  ;;  %v2077_v27 = vor.u32 %v2495_v16, %v2074_v17  ;;  %v2186_v34 = vld [vmem:[%s3747_s3 + $0x378] sm:$0xf0]  ;;  %v2061_v39 = vor.u32 %v2491_v29, %v2058_v30  ;;  %v2552_v16 = vld [vmem:[%s3749_s5 + $0x50] sm:$0xff]  ;;  %v2559_v36 = vld [vmem:[%s3749_s5 + $0x88] sm:$0xff] }
  0xca   :  { %1238 = vmatpush.bf16.msra.mxu1 %v1997_v28  ;;  %v2205_v28 = vor.u32 %v2527_v21, %v2202_v22  ;;  %v2189_v40 = vor.u32 %v2523_v33, %v2186_v34  ;;  %v2564_v17 = vld [vmem:[%s3749_s5 + $0xb0] sm:$0xff]  ;;  %v2563_v21 = vld [vmem:[%s3749_s5 + $0xa8] sm:$0xff] }
  0xcb   :  { %1194 = vmatmul.bf16.vlgmr.msrb.gmra.mxu1 %v3245_v54 }
  0xcc   :  { %1206 = vmatpush.bf16.msrb.mxu2 %v2009_v46  ;;  %v2170_v46 = vld [vmem:[%s3747_s3 + $0x358] sm:$0xf0] }
  0xcd   :  { %1226 = vmatpush.bf16.msra.mxu0 %v1853_v41  ;;  %1219 = vmatpush.bf16.msrb.mxu3 %v2137_v51  ;;  %v2487_v41 = vld [vmem:[%s3747_s3 + $0x24c] sm:$0xf]  ;;  %v1882_v51 = vld [vmem:[%s3747_s3 + $0x118] sm:$0xf0] }
  0xce   :  { %1239 = vmatpush.bf16.msra.mxu1 %v1981_v42  ;;  %v2042_v42 = vld [vmem:[%s3747_s3 + $0x258] sm:$0xf0] }
  0xcf   :  { %1207 = vmatmul.bf16.vlgmr.msrb.gmra.mxu2 %v3279_v12 }
  0xd0   :  { %1251 = vmatpush.bf16.msra.mxu2 %v2125_v52  ;;  %1220 = vmatmul.bf16.vlgmr.msrb.gmra.mxu3 %v3290_v18  ;;  %v2045_v52 = vor.u32 %v2487_v41, %v2042_v42  ;;  %v2558_v41 = vld [vmem:[%s3749_s5 + $0x80] sm:$0xff]  ;;  %v2573_v42 = vld [vmem:[%s3749_s5 + $0xf8] sm:$0xff] }
  0xd1   :  { %1264 = vmatpush.bf16.msra.mxu3 %v2253_v53  ;;  %1227 = vmatpush.bf16.msra.mxu0 %v1837_v57  ;;  %v2173_v53 = vor.u32 %v2519_v45, %v2170_v46  ;;  %v1757_v57 = vor.u32 %v2415_v47, %v1754_v48  ;;  %v2572_v47 = vld [vmem:[%s3749_s5 + $0xf0] sm:$0xff] }
  0xd2   :  { %1240 = vmatpush.bf16.msra.mxu1 %v1965_v58  ;;  %v1885_v58 = vor.u32 %v2447_v50, %v1882_v51 }
  0xd4   :  { %1252 = vmatpush.bf16.msra.mxu2 %v2109_v1  ;;  %v2010_v1 = vld [vmem:[%s3747_s3 + $0x218] sm:$0xf0] }
  0xd5   :  { %1265 = vmatpush.bf16.msra.mxu3 %v2237_v2  ;;  %1228 = vmatpush.bf16.msra.mxu0 %v1821_v5  ;;  %v2511_v2 = vld [vmem:[%s3747_s3 + $0x30c] sm:$0xf]  ;;  %v2013_v5 = vor.u32 %v2479_v0, %v2010_v1 }
  0xd6   :  { %1241 = vmatpush.bf16.msra.mxu1 %v1949_v6  ;;  %v2141_v6 = vor.u32 %v2511_v2, %v2138_v3 }
  0xd8   :  { %1253 = vmatpush.bf16.msra.mxu2 %v2093_v14  ;;  %v2553_v14 = vld [vmem:[%s3749_s5 + $0x58] sm:$0xff] }
  0xd9   :  { %1266 = vmatpush.bf16.msra.mxu3 %v2221_v15  ;;  %1229 = vmatpush.bf16.msra.mxu0 %v1805_v19  ;;  %v2565_v15 = vld [vmem:[%s3749_s5 + $0xb8] sm:$0xff]  ;;  %v3684_v19 = vld [vmem:[%s3748_s4] sm:$0xf]  ;;  %s1603_s4 = sshll.u32 %s2602_s2, 4  ;;  %s1604_s4 = int_to_ptr.vmem [resolvable:$true] %s1603_s4 }
  0xda   :  { %1242 = vmatpush.bf16.msra.mxu1 %v1933_v20  ;;  %v2551_v20 = vld [vmem:[%s3749_s5 + $0x48] sm:$0xff]  ;;  %v421_v24 = vperm.slane %v3684_v19, 0  ;;  %v423_v1 = vperm.slane %v3684_v19, 2 }
  0xdc   :  { %1254 = vmatpush.bf16.msra.mxu2 %v2077_v27 }
  0xdd   :  { %1267 = vmatpush.bf16.msra.mxu3 %v2205_v28  ;;  %1230 = vmatpush.bf16.msra.mxu0 %v1789_v31  ;;  %v2561_v28 = vld [vmem:[%s3749_s5 + $0x98] sm:$0xff] }
  0xde   :  { %1243 = vmatpush.bf16.msra.mxu1 %v1917_v32  ;;  %v2560_v32 = vld [vmem:[%s3749_s5 + $0x90] sm:$0xff] }
  0xe0   :  { %1255 = vmatpush.bf16.msra.mxu2 %v2061_v39 }
  0xe1   :  { %1268 = vmatpush.bf16.msra.mxu3 %v2189_v40  ;;  %1231 = vmatpush.bf16.msra.mxu0 %v1773_v43 }
  0xe2   :  { %1244 = vmatpush.bf16.msra.mxu1 %v1901_v44  ;;  %v422_v44 = vperm.slane %v3684_v19, 1 }
  0xe4   :  { %1256 = vmatpush.bf16.msra.mxu2 %v2045_v52  ;;  %v2571_v52 = vld [vmem:[%s3749_s5 + $0xe8] sm:$0xff] }
  0xe5   :  { %1269 = vmatpush.bf16.msra.mxu3 %v2173_v53  ;;  %1232 = vmatpush.bf16.msra.mxu0 %v1757_v57 }
  0xe6   :  { %1245 = vmatpush.bf16.msra.mxu1 %v1885_v58  ;;  %v2570_v58 = vld [vmem:[%s3749_s5 + $0xe0] sm:$0xff] }
  0xe8   :  { %1257 = vmatpush.bf16.msra.mxu2 %v2029_v62  ;;  %1233 = vmatmul.bf16.vlgmr.msra.gmra.mxu0 %v3237_v49  ;;  %v2557_v49 = vld [vmem:[%s3749_s5 + $0x78] sm:$0xff] }
  0xe9   :  { %1545 = vmatpush.bf16.msrb.mxu0 %v2549_v61  ;;  %1270 = vmatpush.bf16.msra.mxu3 %v2157_v63  ;;  %v2569_v61 = vld [vmem:[%s3749_s5 + $0xd8] sm:$0xff] }
  0xea   :  { %1246 = vmatmul.bf16.vlgmr.msra.gmra.mxu1 %v3245_v54  ;;  %v2545_v54 = vld [vmem:[%s3749_s5 + $0x18] sm:$0xff] }
  0xeb   :  { %1558 = vmatpush.bf16.msrb.mxu1 %v2557_v49 }
  0xec   :  { %1258 = vmatpush.bf16.msra.mxu2 %v2013_v5 }
  0xed   :  { %1546 = vmatpush.bf16.msrb.mxu0 %v2548_v4  ;;  %1271 = vmatpush.bf16.msra.mxu3 %v2141_v6  ;;  %v2568_v4 = vld [vmem:[%s3749_s5 + $0xd0] sm:$0xff] }
  0xef   :  { %1259 = vmatmul.bf16.vlgmr.msra.gmra.mxu2 %v3279_v12  ;;  %v2544_v12 = vld [vmem:[%s3749_s5 + $0x10] sm:$0xff] }
  0xf0   :  { %1272 = vmatmul.bf16.vlgmr.msra.gmra.mxu3 %v3290_v18  ;;  %v2556_v18 = vld [vmem:[%s3749_s5 + $0x70] sm:$0xff]  ;;  %1571 = vmatpush.bf16.msrb.mxu2 %v2565_v15 }
  0xf1   :  { %1547 = vmatpush.bf16.msrb.mxu0 %v2547_v7  ;;  %1559 = vmatpush.bf16.msrb.mxu1 %v2556_v18 }
  0xf2   :  { %1584 = vmatpush.bf16.msrb.mxu3 %v2573_v42 }
  0xf4   :  { %1572 = vmatpush.bf16.msrb.mxu2 %v2564_v17 }
  0xf5   :  { %1548 = vmatpush.bf16.msrb.mxu0 %v2546_v8  ;;  %1560 = vmatpush.bf16.msrb.mxu1 %v2555_v10  ;;  %v2567_v8 = vld [vmem:[%s3749_s5 + $0xc8] sm:$0xff] }
  0xf6   :  { %1585 = vmatpush.bf16.msrb.mxu3 %v2572_v47 }
  0xf8   :  { %1573 = vmatpush.bf16.msrb.mxu2 %v2563_v21 }
  0xf9   :  { %1549 = vmatpush.bf16.msrb.mxu0 %v2545_v54  ;;  %1561 = vmatpush.bf16.msrb.mxu1 %v2554_v13 }
  0xfa   :  { %1586 = vmatpush.bf16.msrb.mxu3 %v2571_v52 }
  0xfc   :  { %1574 = vmatpush.bf16.msrb.mxu2 %v2562_v26 }
  0xfd   :  { %1550 = vmatpush.bf16.msrb.mxu0 %v2544_v12  ;;  %1562 = vmatpush.bf16.msrb.mxu1 %v2553_v14 }
  0xfe   :  { %1587 = vmatpush.bf16.msrb.mxu3 %v2570_v58 }
 0x100   :  { %1575 = vmatpush.bf16.msrb.mxu2 %v2561_v28 }
 0x101   :  { %1551 = vmatpush.bf16.msrb.mxu0 %v2543_v9  ;;  %1563 = vmatpush.bf16.msrb.mxu1 %v2552_v16  ;;  %v2566_v9 = vld [vmem:[%s3749_s5 + $0xc0] sm:$0xff] }
 0x102   :  { %1588 = vmatpush.bf16.msrb.mxu3 %v2569_v61 }
 0x104   :  { %1576 = vmatpush.bf16.msrb.mxu2 %v2560_v32 }
 0x105   :  { %1552 = vmatpush.bf16.msrb.mxu0 %v2542_v11  ;;  %1564 = vmatpush.bf16.msrb.mxu1 %v2551_v20  ;;  %v424_v20 = vperm.slane %v3684_v19, 3  ;;  %v2575_v19 = vld [vmem:[%s3750_s6] ss:$0 sm:$0xff] }
 0x106   :  { %1589 = vmatpush.bf16.msrb.mxu3 %v2568_v4 }
 0x108   :  { %1577 = vmatpush.bf16.msrb.mxu2 %v2559_v36 }
 0x109   :  { %1565 = vmatpush.bf16.msrb.mxu1 %v2550_v25 }
 0x10a   :  { %1590 = vmatpush.bf16.msrb.mxu3 %v2567_v8 }
 0x10c   :  { %1578 = vmatpush.bf16.msrb.mxu2 %v2558_v41 }
 0x10e   :  { %1591 = vmatpush.bf16.msrb.mxu3 %v2566_v9 }
 0x124   :  { %v1078_v22 = vpop.f32.mrf.mxu0 }
 0x125   :  { %v1091_v23 = vpop.f32.mrf.mxu1  ;;  %v1079_v27 = vadd.f32 %v1078_v22, %v421_v24 }
 0x127   :  { %v1092_v31 = vadd.f32 %v1091_v23, %v1079_v27 }
 0x12c   :  { %v1080_v29 = vpop.f32.mrf.mxu0 }
 0x12d   :  { %v1093_v30 = vpop.f32.mrf.mxu1 }
 0x132   :  { %v1104_v33 = vpop.f32.mrf.mxu2 }
 0x133   :  { %v1105_v34 = vadd.f32 %v1104_v33, %v1092_v31  ;;  %v1117_v35 = vpop.f32.mrf.mxu3 }
 0x134   :  { %v1130_v38 = vpop.f32.mrf.mxu0 }
 0x135   :  { %v1118_v37 = vadd.f32 %v1117_v35, %v1105_v34  ;;  %v1143_v39 = vpop.f32.mrf.mxu1  ;;  %v1131_v48 = vadd.f32 %v1130_v38, %v422_v44 }
 0x137   :  { %v1277_v40 = vmax.f32 %v1118_v37, 0.0  ;;  %v1144_v53 = vadd.f32 %v1143_v39, %v1131_v48 }
 0x139   :  { %v1281_v43 = vpack.c.bf16 %v1277_v40, %v1277_v40 }
 0x13a   :  { %v1106_v45 = vpop.f32.mrf.mxu2 }
 0x13b   :  { %v1119_v46 = vpop.f32.mrf.mxu3  ;;  %1553 = vmatmul.bf16.vlgmr.msrb.gmra.mxu0 %v1281_v43 }
 0x13c   :  { %v1132_v50 = vpop.f32.mrf.mxu0 }
 0x13d   :  { %v1145_v51 = vpop.f32.mrf.mxu1 }
 0x142   :  { %v1156_v55 = vpop.f32.mrf.mxu2 }
 0x143   :  { %v1157_v56 = vadd.f32 %v1156_v55, %v1144_v53  ;;  %v1169_v57 = vpop.f32.mrf.mxu3 }
 0x145   :  { %v1170_v59 = vadd.f32 %v1169_v57, %v1157_v56  ;;  %v1182_v60 = vpop.f32.mrf.mxu0 }
 0x146   :  { %v1183_v5 = vadd.f32 %v1182_v60, %v423_v1 }
 0x147   :  { %v1278_v62 = vmax.f32 %v1170_v59, 0.0 }
 0x148   :  { %v1195_v63 = vpop.f32.mrf.mxu1 }
 0x149   :  { %v1282_v0 = vpack.c.bf16 %v1278_v62, %v1278_v62  ;;  %v1196_v49 = vadd.f32 %v1195_v63, %v1183_v5 }
 0x14a   :  { %v1158_v2 = vpop.f32.mrf.mxu2 }
 0x14b   :  { %v1171_v3 = vpop.f32.mrf.mxu3  ;;  %1566 = vmatmul.bf16.vlgmr.msrb.gmra.mxu1 %v1282_v0 }
 0x14d   :  { %v1184_v6 = vpop.f32.mrf.mxu0 }
 0x150   :  { %v1197_v7 = vpop.f32.mrf.mxu1 }
 0x152   :  { %v1208_v54 = vpop.f32.mrf.mxu2 }
 0x153   :  { %v1221_v12 = vpop.f32.mrf.mxu3  ;;  %v1209_v18 = vadd.f32 %v1208_v54, %v1196_v49 }
 0x155   :  { %v1222_v10 = vadd.f32 %v1221_v12, %v1209_v18 }
 0x157   :  { %v1279_v11 = vmax.f32 %v1222_v10, 0.0 }
 0x159   :  { %v1283_v13 = vpack.c.bf16 %v1279_v11, %v1279_v11 }
 0x15a   :  { %v1210_v14 = vpop.f32.mrf.mxu2 }
 0x15b   :  { %v1223_v15 = vpop.f32.mrf.mxu3  ;;  %1579 = vmatmul.bf16.vlgmr.msrb.gmra.mxu2 %v1283_v13 }
 0x165   :  { %v1234_v16 = vpop.f32.mrf.mxu0 }
 0x166   :  { %v1235_v21 = vadd.f32 %v1234_v16, %v424_v20 }
 0x167   :  { %v1247_v17 = vpop.f32.mrf.mxu1 }
 0x168   :  { %v1248_v24 = vadd.f32 %v1247_v17, %v1235_v21 }
 0x16d   :  { %v1236_v22 = vpop.f32.mrf.mxu0 }
 0x16f   :  { %v1249_v23 = vpop.f32.mrf.mxu1 }
 0x172   :  { %v1260_v25 = vpop.f32.mrf.mxu2 }
 0x173   :  { %v1261_v26 = vadd.f32 %v1260_v25, %v1248_v24  ;;  %v1273_v27 = vpop.f32.mrf.mxu3 }
 0x175   :  { %v1274_v28 = vadd.f32 %v1273_v27, %v1261_v26 }
 0x177   :  { %v1280_v29 = vmax.f32 %v1274_v28, 0.0 }
 0x179   :  { %v1284_v30 = vpack.c.bf16 %v1280_v29, %v1280_v29 }
 0x17a   :  { %v1262_v31 = vpop.f32.mrf.mxu2 }
 0x17b   :  { %v1275_v32 = vpop.f32.mrf.mxu3  ;;  %1592 = vmatmul.bf16.vlgmr.msrb.gmra.mxu3 %v1284_v30 }
 0x1b8   :  { %v1554_v33 = vpop.f32.mrf.mxu0 }
 0x1b9   :  { %v1555_v39 = vadd.f32 %v2575_v19, %v1554_v33 }
 0x1c0   :  { %v1556_v34 = vpop.f32.mrf.mxu0 }
 0x1c8   :  { %v1567_v35 = vpop.f32.mrf.mxu1 }
 0x1c9   :  { %v1568_v40 = vadd.f32 %v1567_v35, %v1555_v39 }
 0x1d0   :  { %v1569_v36 = vpop.f32.mrf.mxu1 }
 0x1de   :  { %v1580_v37 = vpop.f32.mrf.mxu2 }
 0x1df   :  { %v1581_v41 = vadd.f32 %v1580_v37, %v1568_v40 }
 0x1e6   :  { %v1582_v38 = vpop.f32.mrf.mxu2 }
 0x1fe   :  { %v1593_v42 = vpop.f32.mrf.mxu3 }
 0x1ff   :  { %v1594_v43 = vadd.f32 %v1593_v42, %v1581_v41 }
 0x201   :  { %1597 = vst [vmem:[#allocation2] sm:$0xff] %v1594_v43 }
 0x202   :  { %1608 = dma.vmem_to_hbm [thread:$0]  %s1604_s4, 128, %s1606_s8, [#allocation3]  }
 0x206   :  { %v1595_v44 = vpop.f32.mrf.mxu3 }
 0x207   :  { %2600 = dma.done.wait [#allocation3], 128  }
 0x208   :  { %2601 = vsyncadd [#allocation3], 4294967168 }
 0x209   :  { %1613 = vsyncpa [#allocation3], 1 }

</bundles_post_ra>
